<compile_context>
chip_gen: v7x
topology: tpu7x:2x2x1
jax: 0.10.0
libtpu: 0.0.40
codegen_flags: <defaults>
</compile_context>

<pallas_src>
import jax
import jax.numpy as jnp
from jax.experimental import pallas as pl
from jax.experimental.pallas import tpu as pltpu


# ---------------------------------------------------------------- kernels ---

def _residual_pw_eval_kernel(x_ref, w_ref, b_ref, o_ref):
    # x_ref : (Cp, tHW) one NCHW tile of one batch element (input dtype)
    # w_ref : (Cp, Cp)  1x1-conv weight, untransposed (resident, input dtype)
    # b_ref : (Cp, 1)   bias (f32, resident)
    x = x_ref[...]
    y = jnp.dot(w_ref[...], x, preferred_element_type=jnp.float32)   # MXU, f32 acc
    y = y + b_ref[...]
    if o_ref.dtype == jnp.float32:
        o_ref[...] = x + y
    else:
        # Downcast once, residual add in the narrow dtype (packed VALU on v6e/v7x).
        o_ref[...] = x + y.astype(o_ref.dtype)


def _residual_pw_drop_kernel(x_ref, w_ref, b_ref, s_ref, o_ref):
    # s_ref : (N,) per-batch drop-path scale keep/(1-drop), SMEM scalar table
    n = pl.program_id(0)
    x = x_ref[...]
    y = jnp.dot(w_ref[...], x, preferred_element_type=jnp.float32)
    y = (y + b_ref[...]) * s_ref[n]
    if o_ref.dtype == jnp.float32:
        o_ref[...] = x + y
    else:
        o_ref[...] = x + y.astype(o_ref.dtype)


# ------------------------------------------------------------- tile planner ---

def _cdiv(a, b):
    return -(-a // b)


def _round_down_128(v):
    return max(128, (v // 128) * 128)


def _vmem_capacity_bytes():
    try:
        info = pltpu.get_tpu_info()
        for attr in ("vmem_capacity_bytes", "vmem_bytes", "vmem_size_bytes"):
            v = getattr(info, attr, None)
            if v:
                return int(v)
    except Exception:
        pass
    return 64 << 20   # conservative default (v7x-class)


def _plan_tiles(n_batch, c_pad, hw, itemsize):
    """Pick (t_hw, hw_pad, vmem_limit_bytes) from a per-generation byte budget."""
    vmem = _vmem_capacity_bytes()
    small_vmem = vmem <= (64 << 20)                 # v7x-class: 64 MiB physical
    blk_budget = (2 << 20) if small_vmem else (6 << 20)   # bytes per x block
    total_cap = (40 << 20) if small_vmem else (96 << 20)  # total VMEM cap
    min_steps = 8 if small_vmem else 2              # keep megacore / pipeline fed

    # Byte-sized, lane-dense (multiple of 128) HW tile.
    t = _round_down_128(blk_budget // max(1, c_pad * itemsize))
    t = min(t, _round_down_128(_cdiv(hw, 128) * 128))

    def vmem_need(tt):
        return (2 * 2 * c_pad * tt * itemsize        # x + out tiles, double-buffered
                + 2 * c_pad * tt * 4                 # f32 dot result + epilogue temp
                + 2 * c_pad * c_pad * itemsize       # resident weight
                + 2 * c_pad * 4)                     # resident bias

    while vmem_need(t) > total_cap and t > 128:      # respect the physical cap
        t = _round_down_128(t - 128)
    while n_batch * _cdiv(hw, t) < min_steps and t > 128:   # keep grid populated
        t = _round_down_128(t // 2)

    hw_pad = _cdiv(hw, t) * t                        # pad HW up to a tile multiple
    need = vmem_need(t)
    vmem_limit = int(min(max(int(need * 1.25), 16 << 20), total_cap))
    return t, hw_pad, vmem_limit


# ---------------------------------------------------------------- wrapper ---

def residual_forward(x_nchw, weight, bias, *, drop=0.0, training=False, rng=None):
    """out = x + conv1x1(x) [* per-batch drop-path scale], matching Residual.forward."""
    N, C, H, W = x_nchw.shape
    HW = H * W
    in_dtype = x_nchw.dtype
    isz = jnp.dtype(in_dtype).itemsize

    # Pad very narrow channel counts up to the sublane pack (8 f32 / 16 bf16 / 32 i8).
    pack = 8 * (4 // isz)
    Cp = pack if C < pack else C

    t_hw, HWp, vmem_limit = _plan_tiles(N, Cp, HW, isz)

    # NCHW -> (N, C, HW) is a free reshape; zero-pad C / HW only when needed.
    x = x_nchw.reshape(N, C, HW)
    if Cp != C or HWp != HW:
        x = jnp.pad(x, ((0, 0), (0, Cp - C), (0, HWp - HW)))

    # PyTorch conv1x1 weight is (C_out, C_in[,1,1]); used untransposed: y = W @ x.
    w = weight.reshape(C, C).astype(in_dtype)
    b = bias.reshape(C).astype(jnp.float32)
    if Cp != C:
        w = jnp.pad(w, ((0, Cp - C), (0, Cp - C)))
        b = jnp.pad(b, ((0, Cp - C),))
    b = b.reshape(Cp, 1)

    grid = (N, HWp // t_hw)

    in_specs = [
        pl.BlockSpec((None, Cp, t_hw), lambda n, j: (n, 0, j)),   # x tile
        pl.BlockSpec((Cp, Cp), lambda n, j: (0, 0)),              # weight (resident)
        pl.BlockSpec((Cp, 1), lambda n, j: (0, 0)),               # bias (resident)
    ]
    args = [x, w, b]

    use_drop = bool(training) and drop > 0.0
    if use_drop:
        if rng is None:
            raise ValueError("training=True with drop>0 requires an rng key")
        keep = (jax.random.uniform(rng, (N,)) >= drop).astype(jnp.float32)
        scale = keep / (1.0 - drop)
        in_specs.append(pl.BlockSpec(memory_space=pltpu.MemorySpace.SMEM))
        args.append(scale)
        kernel = _residual_pw_drop_kernel
    else:
        kernel = _residual_pw_eval_kernel      # eval path: no scale plumbing/multiply

    out = pl.pallas_call(
        kernel,
        out_shape=jax.ShapeDtypeStruct((N, Cp, HWp), in_dtype),
        grid=grid,
        in_specs=in_specs,
        out_specs=pl.BlockSpec((None, Cp, t_hw), lambda n, j: (n, 0, j)),
        compiler_params=pltpu.CompilerParams(
            dimension_semantics=("parallel", "parallel"),
            vmem_limit_bytes=vmem_limit),
    )(*args)

    if Cp != C or HWp != HW:
        out = out[:, :C, :HW]
    return out.reshape(N, C, H, W)


# -------------------------------------------------------------- reference ---

def _reference(x_nchw, weight, bias):
    # Pure-JAX reference: x + Conv2d(C, C, kernel_size=1)(x)
    y = jnp.einsum("nchw,oc->nohw", x_nchw.astype(jnp.float32),
                   weight.astype(jnp.float32))
    y = y + bias.astype(jnp.float32)[None, :, None, None]
    return x_nchw.astype(jnp.float32) + y


if __name__ == "__main__":
    key = jax.random.PRNGKey(0)
    k_x, k_w, k_b, k_x2 = jax.random.split(key, 4)

    # --- test 1: f32, HW a multiple of 128 ---------------------------------
    N, C, H, W = 2, 8, 16, 16
    x = jax.random.normal(k_x, (N, C, H, W), dtype=jnp.float32)
    weight = jax.random.normal(k_w, (C, C), dtype=jnp.float32) * 0.1
    bias = jax.random.normal(k_b, (C,), dtype=jnp.float32) * 0.05

    ref = _reference(x, weight, bias)
    out = residual_forward(x, weight, bias, drop=0.1, training=False)
    out = jax.block_until_ready(out)
    assert out.shape == (N, C, H, W) and out.dtype == jnp.float32
    assert jnp.allclose(out, ref, atol=1e-5, rtol=1e-5), (
        float(jnp.max(jnp.abs(out - ref))))

    # --- test 2: bf16 I/O, odd spatial size (exercises C / HW padding) -----
    H2 = W2 = 14
    x2 = jax.random.normal(k_x2, (N, C, H2, W2), dtype=jnp.float32)
    ref2 = _reference(x2, weight, bias)
    out2 = residual_forward(x2.astype(jnp.bfloat16),
                            weight.astype(jnp.bfloat16), bias,
                            drop=0.0, training=False)
    out2 = jax.block_until_ready(out2)
    assert out2.shape == (N, C, H2, W2) and out2.dtype == jnp.bfloat16
    assert jnp.allclose(out2.astype(jnp.float32), ref2, atol=5e-2, rtol=5e-2)

    print("KERNEL_OK")
</pallas_src>

<mosaic_0001>
module attributes {stable_mosaic.version = 11 : i64} {
  func.func @_residual_pw_eval_kernel(%arg0: i32, %arg1: i32, %arg2: memref<1x8x128xf32, #tpu.memory_space<vmem>>, %arg3: memref<8x8xf32, #tpu.memory_space<vmem>>, %arg4: memref<8x1xf32, #tpu.memory_space<vmem>>, %arg5: memref<1x8x128xf32, #tpu.memory_space<vmem>>) attributes {dimension_semantics = [#tpu.dimension_semantics<parallel>, #tpu.dimension_semantics<parallel>], iteration_bounds = array<i64: 2, 2>, scalar_prefetch = 0 : i64, scratch_operands = 0 : i64, tpu.core_type = #tpu.core_type<tc>, window_params = [{transform_indices = @transform_0, window_bounds = array<i64: 1, 8, 128>}, {pipeline_mode = #tpu.pipeline_mode<synchronous>, transform_indices = @transform_1, window_bounds = array<i64: 8, 8>}, {pipeline_mode = #tpu.pipeline_mode<synchronous>, transform_indices = @transform_2, window_bounds = array<i64: 8, 1>}, {transform_indices = @transform_3, window_bounds = array<i64: 1, 8, 128>}]} {
    %c0 = arith.constant 0 : index
    %c0_0 = arith.constant 0 : index
    %c0_1 = arith.constant 0 : index
    %0 = vector.load %arg2[%c0, %c0_0, %c0_1] : memref<1x8x128xf32, #tpu.memory_space<vmem>>, vector<1x8x128xf32>
    %1 = vector.shape_cast %0 : vector<1x8x128xf32> to vector<8x128xf32>
    %c0_2 = arith.constant 0 : index
    %c0_3 = arith.constant 0 : index
    %2 = vector.load %arg3[%c0_2, %c0_3] : memref<8x8xf32, #tpu.memory_space<vmem>>, vector<8x8xf32>
    %cst = arith.constant dense<0.000000e+00> : vector<8x128xf32>
    %3 = tpu.matmul %2, %1, %cst {dimension_numbers = #tpu.dot_dimension_numbers<[1], [0], [0], [1], [0, 0, 1, 1], [], []>} : vector<8x8xf32>, vector<8x128xf32>, vector<8x128xf32> -> vector<8x128xf32>
    %c0_4 = arith.constant 0 : index
    %c0_5 = arith.constant 0 : index
    %4 = vector.load %arg4[%c0_4, %c0_5] : memref<8x1xf32, #tpu.memory_space<vmem>>, vector<8x1xf32>
    %5 = vector.broadcast %4 : vector<8x1xf32> to vector<8x128xf32>
    %6 = arith.addf %3, %5 : vector<8x128xf32>
    %7 = arith.addf %1, %6 : vector<8x128xf32>
    %c0_6 = arith.constant 0 : index
    %c0_7 = arith.constant 0 : index
    %c0_8 = arith.constant 0 : index
    %8 = vector.load %arg5[%c0_6, %c0_7, %c0_8] : memref<1x8x128xf32, #tpu.memory_space<vmem>>, vector<1x8x128xf32>
    %9 = vector.shape_cast %8 : vector<1x8x128xf32> to vector<8x128xf32>
    %10 = vector.shape_cast %7 : vector<8x128xf32> to vector<1x8x128xf32>
    tpu.vector_store %arg5[%c0_6, %c0_7, %c0_8], %10 {strides = array<i32>} : memref<1x8x128xf32, #tpu.memory_space<vmem>>, vector<1x8x128xf32>,
    return
  }
  func.func @transform_0(%arg0: i32, %arg1: i32) -> (i32, i32, i32) {
    %c0_i32 = arith.constant 0 : i32
    %c0_i32_0 = arith.constant 0 : i32
    return %arg0, %c0_i32, %arg1 : i32, i32, i32
  }
  func.func @transform_1(%arg0: i32, %arg1: i32) -> (i32, i32) {
    %c0_i32 = arith.constant 0 : i32
    %c0_i32_0 = arith.constant 0 : i32
    %c0_i32_1 = arith.constant 0 : i32
    return %c0_i32, %c0_i32_0 : i32, i32
  }
  func.func @transform_2(%arg0: i32, %arg1: i32) -> (i32, i32) {
    %c0_i32 = arith.constant 0 : i32
    %c0_i32_0 = arith.constant 0 : i32
    %c0_i32_1 = arith.constant 0 : i32
    return %c0_i32, %c0_i32_0 : i32, i32
  }
  func.func @transform_3(%arg0: i32, %arg1: i32) -> (i32, i32, i32) {
    %c0_i32 = arith.constant 0 : i32
    %c0_i32_0 = arith.constant 0 : i32
    return %arg0, %c0_i32, %arg1 : i32, i32, i32
  }
}

</mosaic_0001>

<bundles_post_ra>
// kernel: tpu_custom_call.1
= control target key start
LH: loop header
LB: loop body
LE: loop exit
PB: predicated region body
PF: predicated region fallthrough
CT: control target
= control target key end

     0   :  { %8 = vsyncpa [#allocation3], 0  ;;  %s849_s0 = inlined_call_operand.hbm [shape: f32[2,8,256], index: 0, kind: input, shape index: {}]   ;;  %s850_s1 = inlined_call_operand.vmem [shape: f32[8,8], index: 1, kind: input, shape index: {}]   ;;  %s851_s2 = inlined_call_operand.vmem [shape: f32[8,1], index: 2, kind: input, shape index: {}]   ;;  %s852_s3 = inlined_call_operand.hbm [shape: f32[2,8,256], index: 3, kind: output, shape index: {}]  }
   0x1   :  { %10 = vsyncpa [#allocation3 + $0x1], 0 }
   0x2   :  { %11 = vsyncpa [#allocation4], 0 }
   0x3   :  { %13 = vsyncpa [#allocation4 + $0x1], 0  ;;  %s649_s12 = smov 0   ;;  %s651_s13 = smov 0  }
   0x4   :  { %s653_s14 = smov 0   ;;  %s655_s15 = smov 0  }
   0x5   :  { %s657_s16 = smov 0   ;;  %s659_s17 = smov 0  }
   0x6   :  { %s661_s18 = smov 0   ;;  %s663_s19 = smov 0  }
   0x7 LB: > { %s389_s20 = sadd.s32 4294967295, %s622_s19   ;;  %s390_s21 = sadd.s32 4294967294, %s622_s19   ;;  %s622_s19 = sphi %s663_s19, %s19_s19   ;;  %s618_s18 = sphi %s661_s18, %s869_s18   ;;  %s614_s17 = sphi %s659_s17, %s868_s17   ;;  %s610_s16 = sphi %s657_s16, %s867_s16   ;;  %s606_s15 = sphi %s655_s15, %s866_s15   ;;  %s602_s14 = sphi %s653_s14, %s865_s14   ;;  %s598_s13 = sphi %s651_s13, %s864_s13   ;;  %s594_s12 = sphi %s649_s12, %s863_s12  }
   0x8   : > { %s28_s22 = sadd.s32 1, %s614_s17  ;;  %s31_s23 = sadd.s32 1, %s618_s18 }
   0x9   : > { %p29_p0 = scmp.ge.s32.totalorder %s28_s22, 2  ;;  %s40_s24 = sadd.s32 1, %s602_s14 }
   0xa   : > { %p47_p1 = scmp.ne.s32.totalorder %s602_s14, %s598_s13  ;;  %p48_p2 = scmp.eq.s32.totalorder %s622_s19, 0 }
   0xb   : > { %s871_s22 = smov (%p29_p0, %s28_s22), 0  ;;  %s873_s23 = smov (!%p29_p0, %s31_s23), %s618_s18 }
   0xc   : > { %s36_s25 = ssub.s32 %s614_s17, %s871_s22  ;;  %p702_p3 = por %p48_p2, %p47_p1 }
   0xd   : > { %p33_p4 = scmp.ge.s32.totalorder %s873_s23, 2  ;;  %p53_p5 = scmp.ne.s32.totalorder %s598_s13, %s594_s12 }
   0xe   : > { %p54_p6 = scmp.eq.s32.totalorder %s389_s20, 0  ;;  %p121_p7 = scmp.eq.s32.totalorder %s389_s20, 3 }
   0xf   : > { %s875_s23 = smov (%p33_p4, %s873_s23), 0  ;;  %p127_p10 = scmp.eq.s32.totalorder %s390_s21, 3 }
  0x10   : > { %p710_p8 = por %p54_p6, %p53_p5  ;;  %p714_p9 = por %p121_p7, %p47_p1 }
  0x11   : > { %s35_s29 = ssub.s32 %s618_s18, %s875_s23  ;;  %p720_p12 = por %p127_p10, %p53_p5 }
  0x12   : > { %s856_s28 = scalar_select %p714_p9, 1, 0 }
  0x13   : > { %s37_s30 = sor.u32 %s36_s25, %s35_s29  ;;  %p424_p13 = scmp.lt.s32.totalorder %s622_s19, 4 }
  0x14   : > { %p38_p11 = scmp.eq.s32.totalorder %s37_s30, 0  ;;  %s153_s5 = sand.u32 1, %s602_s14  }
  0x15   : > { %s857_s4 = scalar_select %p720_p12, 1, 0 }
  0x16   : > { %s727_s6 = scalar_select %p38_p11, %s602_s14, %s40_s24  }
  0x17   : > { %s393_s7 = sshll.u32 %s153_s5, 3  ;;  %s394_s8 = sshll.u32 %s618_s18, 1 }
  0x18   : > { %s162_s9 = sadd.s32 %s614_s17, %s394_s8  ;;  %s157_s10 = scalar_lea.vmem [#allocation2], %s393_s7 }
  0x19   : > { %s166_s11 = sshll.u32 %s157_s10, 4  ;;  %s395_s20 = sshll.u32 %s162_s9, 7  ;;  %s731_s11 = int_to_ptr.vmem [resolvable:$true] %s166_s11 }
  0x1a   : > { %s736_s29 = scalar_lea.hbm %s849_s0, %s395_s20  ;;  %p740_p0 = pnand %p424_p13, %p702_p3 }
  0x1b   : > { %s154_s30 = scalar_lea.sflag [#allocation3], %s153_s5  ;;  %s494_s7 = scalar_lea.hbm %s736_s29, 128 }
  0x1c   : > { %p495_p4 = scmp.ne.s32.totalorder %s736_s29, %s494_s7  ;;  %p496_p5 = pneg %p740_p0 }
  0x1d   : > { %s499_s9 = scalar_lea.hbm %s849_s0, 512  ;;  %p500_p3 = scmp.lt.u32.totalorder %s736_s29, %s849_s0 }
  0x1e   : > { %p497_p6 = pnand %p496_p5, %p495_p4  ;;  %p501_p10 = scmp.lt.u32.totalorder %s499_s9, %s494_s7 }
  0x1f   : > { %p503_p13 = scmp.lt.u32.totalorder %s494_s7, %s736_s29 }
  0x20   : > { %p498_p7 = pneg %p497_p6  ;;  %p502_p11 = por %p501_p10, %p500_p3 }
  0x22   : > { %p504_p1 = por %p503_p13, %p502_p11 }
  0x24   : > { %p505_p2 = pnand %p504_p1, %p498_p7 }
  0x26   : > { %508 = shalt.err (!%p505_p2)
}
  0x27   : > { %s509_s5 = scalar_lea.vmem %s731_s11, 128  ;;  %s624_s21 = smov [#allocation2]  }
  0x28   : > { %p510_p4 = scmp.ne.s32.totalorder %s731_s11, %s509_s5  ;;  %s514_s25 = sshll.u32 %s624_s21, 4  ;;  %s515_s25 = int_to_ptr.vmem [resolvable:$false] %s514_s25 }
  0x29   : > { %s516_s26 = scalar_lea.vmem %s515_s25, 256  ;;  %p517_p9 = scmp.lt.s32.totalorder %s731_s11, %s515_s25 }
  0x2a   : > { %p512_p6 = pnand %p510_p4, %p496_p5  ;;  %p518_p3 = scmp.lt.s32.totalorder %s516_s26, %s509_s5 }
  0x2c   : > { %p513_p12 = pneg %p512_p6  ;;  %p519_p10 = por %p518_p3, %p517_p9 }
  0x2e   : > { %p520_p11 = pnand %p519_p10, %p513_p12 }
  0x30   : > { %523 = shalt.err (!%p520_p11)
}
  0x31   : > { %419 = dma.hbm_to_vmem [thread:$0]  (!%p740_p0), %s736_s29, 128, %s731_s11, %s154_s30  }
  0x32   : > { %p859_p1 = scmp.lt.s32.totalorder %s622_s19, 5  ;;  %p860_p2 = scmp.ge.s32.totalorder %s622_s19, 1 }
  0x34   : > { %p172_p5 = pnand %p860_p2, %p859_p1 }
  0x35   : > { %s776_s7 = sand.u32 (!%p172_p5), 1, %s598_s13  }
  0x36   : > { %175 = sbr.rel (%p172_p5) target bundleno = 295 (0x127), region = 32  ;;  %s397_s8 = sshll.u32 (!%p172_p5), %s776_s7, 3 }
  0x37   : > { %s178_s9 = scalar_lea.sflag (!%p172_p5), [#allocation3], %s776_s7  ;;  %s181_s10 = scalar_lea.vmem (!%p172_p5), [#allocation2], %s397_s8 }
  0x3d   : > { %585 = dma.done.wait (%p710_p8), %s178_s9, 128  }
  0x3e   : > { %587 = vsyncadd (%p710_p8), %s178_s9, 4294967168  ;;  %v625_v0 = vmov 0.0   ;;  %vm626_vm0 = vmmov 0   ;;  %v627_v1 = vmov 0   ;;  %vm212_vm1 = vcmask 64512   ;;  %v204_v2 = vld [vmem:[%s181_s10] sm:$0xff] }
  0x3f   : > { %407 = vmatprep.subr.mxu0 %v625_v0  ;;  %409 = vmatprep.mubr.msk.f32.mxu0 %vm626_vm0, %v625_v0  ;;  %v205_v3 = vld [vmem:[%s850_s1] sm:$0xff]  ;;  %s401_s27 = sshll.u32 %s610_s16, 1  ;;  %s203_s21 = scalar_lea.vmem [#allocation5], %s397_s8 }
  0x40   : > { %493 = vset.pattern.permute.xlu0 %v627_v1  ;;  %v206_v4 = vld [vmem:[%s851_s2] sm:$0xff]  ;;  %408 = vmatpush3.msra.mxu0 %v204_v2  ;;  %s300_s20 = sadd.s32 %s606_s15, %s401_s27  ;;  %s304_s25 = sshll.u32 %s203_s21, 4  ;;  %s797_s25 = int_to_ptr.vmem [resolvable:$true] %s304_s25 }
  0x41   : > { %209 = vperm.xlu0 %493, %v206_v4   ;;  %410 = vmatmul.mubr.msk.f32.vlgmr.msra.gmra.mrb[0].mxu0 %vm212_vm1, %v205_v3  ;;  %s402_s5 = sshll.u32 %s300_s20, 7  ;;  %s289_s15 = scalar_lea.sflag [#allocation4], %s776_s7 }
  0x42   : > { %s795_s10 = scalar_lea.hbm %s852_s3, %s402_s5  ;;  %s524_s16 = scalar_lea.vmem %s797_s25, 128 }
  0x43   : > { %p525_p8 = scmp.ne.s32.totalorder %s797_s25, %s524_s16  ;;  %p861_p9 = scmp.ne.s32.totalorder %s856_s28, 0 }
  0x44   : > { %s628_s8 = smov [#allocation5]  }
  0x45   : > { %p526_p12 = pnand %p525_p8, %p861_p9  ;;  %s528_s11 = sshll.u32 %s628_s8, 4  ;;  %s529_s11 = int_to_ptr.vmem [resolvable:$false] %s528_s11 }
  0x46   : > { %s530_s29 = scalar_lea.vmem %s529_s11, 256  ;;  %p531_p7 = scmp.lt.s32.totalorder %s797_s25, %s529_s11 }
  0x47   : > { %p527_p0 = pneg %p526_p12  ;;  %p532_p13 = scmp.lt.s32.totalorder %s530_s29, %s524_s16 }
  0x49   : > { %p533_p4 = por %p532_p13, %p531_p7 }
  0x4b   : > { %p534_p6 = pnand %p533_p4, %p527_p0 }
  0xc0   : > { %v210_v5 = vpop.permute.xlu0 %209 }
 0x114   : > { %v282_v6 = vpop.f32.mrb[0].mxu0 }
 0x115   : > { %v283_v7 = vadd.f32 %v282_v6, %v210_v5  ;;  %v411_v8 = vpop.f32.mrb[1].mxu0 }
 0x117   : > { %v286_v9 = vadd.f32 %v283_v7, %v204_v2 }
 0x119   : > { %287 = vst [vmem:[%s203_s21] sm:$0xff] %v286_v9 }
 0x11a   : > { %537 = shalt.err (!%p534_p6)
}
 0x11b   : > { %s538_s7 = scalar_lea.hbm %s795_s10, 128  ;;  %s542_s27 = scalar_lea.hbm %s852_s3, 512 }
 0x11c   : > { %p539_p3 = scmp.ne.s32.totalorder %s795_s10, %s538_s7  ;;  %p543_p1 = scmp.lt.u32.totalorder %s795_s10, %s852_s3 }
 0x11d   : > { %p544_p2 = scmp.lt.u32.totalorder %s542_s27, %s538_s7  ;;  %p546_p8 = scmp.lt.u32.totalorder %s538_s7, %s795_s10 }
 0x11e   : > { %p540_p10 = pnand %p539_p3, %p861_p9 }
 0x11f   : > { %p545_p5 = por %p544_p2, %p543_p1 }
 0x120   : > { %p541_p11 = pneg %p540_p10 }
 0x121   : > { %p547_p12 = por %p546_p8, %p545_p5 }
 0x123   : > { %p548_p0 = pnand %p547_p12, %p541_p11 }
 0x125   : > { %551 = shalt.err (!%p548_p0)
}
 0x126   : > { %414 = dma.vmem_to_hbm [thread:$0]  (%p861_p9), %s797_s25, 128, %s795_s10, %s289_s15  }
 0x127 PF: > { %p425_p7 = scmp.ge.s32.totalorder %s622_s19, 2  ;;  %s316_s21 = sand.u32 1, %s594_s12  }
 0x128   : > { %p862_p13 = scmp.ne.s32.totalorder %s857_s4, 0  ;;  %s317_s26 = scalar_lea.sflag [#allocation4], %s316_s21 }
 0x12a   : > { %p421_p4 = pnand %p425_p7, %p862_p13 }
 0x12c   : > { %589 = dma.done.wait (!%p421_p4), %s317_s26, 128  }
 0x12d   : > { %591 = vsyncadd (!%p421_p4), %s317_s26, 4294967168  ;;  %s19_s19 = sadd.s32 1, %s622_s19   ;;  %s863_s12 = smov %s598_s13 }
 0x12e   : > { %p16_p6 = scmp.ge.s32.totalorder %s19_s19, 6   ;;  %s864_s13 = smov %s602_s14 }
 0x12f   : > { %s865_s14 = smov %s727_s6  ;;  %s866_s15 = smov %s614_s17 }
 0x130   : > { %s867_s16 = smov %s618_s18  ;;  %s868_s17 = smov %s871_s22 }
 0x131   : > { %s869_s18 = smov %s875_s23  ;;  %18 = sbr.rel (!%p16_p6) target bundleno = 7 (0x7), region = 77 }
 0x138   :  { %322 = vsyncpa [#allocation3], 1 }
 0x139   :  { %324 = vsyncpa [#allocation3 + $0x1], 1 }
 0x13a   :  { %325 = vsyncpa [#allocation4], 1 }
 0x13b   :  { %327 = vsyncpa [#allocation4 + $0x1], 1 }

</bundles_post_ra>
